<compile_context>
chip_gen: v5e
topology: v5e:2x2
jax: 0.10.0
libtpu: 0.0.40
codegen_flags: <defaults>
</compile_context>

<pallas_src>
import functools

import jax
import jax.numpy as jnp
from jax.experimental import pallas as pl
from jax.experimental.pallas import tpu as pltpu

_SUBLANE = 8                                   # f32 sublane height
_TK_LARGE = 512                                # K tile for the large-K fallback
_SINGLE_SHOT_VMEM_BYTES = 16 * 1024 * 1024     # conservative "fits VMEM" budget


# ----------------------------- kernels ------------------------------------ #

def _linear_single_kernel(x_ref, w_ref, b_ref, o_ref):
    """One-shot y = x @ w + b; everything resident in VMEM, single grid step."""
    o_ref[...] = (
        jnp.dot(x_ref[...], w_ref[...], preferred_element_type=jnp.float32)
        + b_ref[...]
    ).astype(o_ref.dtype)


def _linear_ktiled_kernel(x_ref, w_ref, b_ref, o_ref):
    """K-tiled y = x @ w + b; output block is resident across the K axis
    (constant out index_map) so we accumulate directly into o_ref (f32)."""
    k = pl.program_id(0)

    @pl.when(k == 0)
    def _():
        o_ref[...] = jnp.broadcast_to(b_ref[...], o_ref.shape).astype(o_ref.dtype)

    o_ref[...] += jnp.dot(
        x_ref[...], w_ref[...], preferred_element_type=jnp.float32
    ).astype(o_ref.dtype)


# ----------------------------- wrappers ------------------------------------ #

def pallas_linear(x_flat, w, b):
    """y = x_flat @ w + b as a single Pallas TPU kernel."""
    M, K = x_flat.shape
    Kw, N = w.shape
    assert K == Kw
    b2 = b.reshape(1, N)

    nbytes = 4 * (M * K + K * N + N + M * N)
    if nbytes <= _SINGLE_SHOT_VMEM_BYTES:
        # Small problem: one grid step, no accumulator, no pipeline overhead.
        return pl.pallas_call(
            _linear_single_kernel,
            out_shape=jax.ShapeDtypeStruct((M, N), x_flat.dtype),
            grid_spec=pltpu.PrefetchScalarGridSpec(
                num_scalar_prefetch=0,
                grid=(1,),
                in_specs=[
                    pl.BlockSpec((M, K), lambda k: (0, 0)),
                    pl.BlockSpec((K, N), lambda k: (0, 0)),
                    pl.BlockSpec((1, N), lambda k: (0, 0)),
                ],
                out_specs=pl.BlockSpec((M, N), lambda k: (0, 0)),
            ),
            compiler_params=pltpu.CompilerParams(
                dimension_semantics=("arbitrary",),
            ),
        )(x_flat, w, b2)

    # Large-K fallback: tile the reduction axis, accumulate into the resident
    # f32 output block (no separate accumulator scratch).
    assert x_flat.dtype == jnp.float32, "K-tiled path accumulates in the output"
    tk = _TK_LARGE
    assert K % tk == 0, "pad K to a multiple of 512 for the K-tiled path"
    return pl.pallas_call(
        _linear_ktiled_kernel,
        out_shape=jax.ShapeDtypeStruct((M, N), jnp.float32),
        grid_spec=pltpu.PrefetchScalarGridSpec(
            num_scalar_prefetch=0,
            grid=(K // tk,),
            in_specs=[
                pl.BlockSpec((M, tk), lambda k: (0, k)),
                pl.BlockSpec((tk, N), lambda k: (k, 0)),
                pl.BlockSpec((1, N), lambda k: (0, 0)),
            ],
            out_specs=pl.BlockSpec((M, N), lambda k: (0, 0)),
        ),
        compiler_params=pltpu.CompilerParams(
            dimension_semantics=("arbitrary",),
            vmem_limit_bytes=64 * 1024 * 1024,
        ),
    )(x_flat, w, b2)


def fold_rotation_into_weights(w, b, channels, height, width):
    """One-time (setup) fold of the rotation-average into the linear params.

    Returns (w_eff, b_eff) such that the full non-export forward
        (internal(x) + flip(internal(flip(x,[2,3])), [1])) / 2
    equals  flatten(x) @ w_eff + b_eff.
    """
    K, N = w.shape
    assert K == channels * height * width
    idx = jnp.arange(K, dtype=jnp.int32).reshape(channels, height, width)
    perm = jnp.flip(idx, axis=(1, 2)).reshape(K)        # involution on K
    w_rot = jnp.flip(w, axis=1)[perm, :]                # P(flip(W, 1))
    w_eff = 0.5 * (w + w_rot)
    b_eff = 0.5 * (b + jnp.flip(b, axis=0))
    return w_eff, b_eff


def rotation_wrapper_forward(x, params, export_mode=False):
    """Forward of RotationWrapperModel with a synthetic linear internal model.

    params: dict with raw ("w", "b") and rotation-folded ("w_eff", "b_eff").
    """
    B, C, H, W = x.shape
    x_flat = x.reshape(B, C * H * W)

    # Pad batch up to the f32 sublane height for dense sublane utilization
    # (negligible cost at this size; sliced off after the kernel).
    M = max(_SUBLANE, -(-B // _SUBLANE) * _SUBLANE)
    if M != B:
        x_flat = jnp.pad(x_flat, ((0, M - B), (0, 0)))

    if export_mode:
        y = pallas_linear(x_flat, params["w"], params["b"])
    else:
        y = pallas_linear(x_flat, params["w_eff"], params["b_eff"])
    return y[:B]


# ------------------------------- demo -------------------------------------- #

if __name__ == "__main__":
    key = jax.random.PRNGKey(0)
    B, C, board = 2, 4, 16
    H = Wd = board
    Din, Dout = C * H * Wd, board * board            # 1024 -> 256
    kx, kw, kb = jax.random.split(key, 3)
    x = jax.random.normal(kx, (B, C, H, Wd), dtype=jnp.float32)
    w = jax.random.normal(kw, (Din, Dout), dtype=jnp.float32) * 0.05
    b = jax.random.normal(kb, (Dout,), dtype=jnp.float32) * 0.1

    # Static weight prep: done once at model setup, not per forward call.
    w_eff, b_eff = fold_rotation_into_weights(w, b, C, H, Wd)
    params = {"w": w, "b": b, "w_eff": w_eff, "b_eff": b_eff}

    fwd = jax.jit(functools.partial(rotation_wrapper_forward, export_mode=False))
    out = jax.block_until_ready(fwd(x, params))

    # Pure-JAX reference of the exact PyTorch semantics.
    def internal_ref(z):
        return z.reshape(z.shape[0], -1) @ w + b

    y0 = internal_ref(x)
    y_flip = internal_ref(jnp.flip(x, axis=(2, 3)))
    ref = (y0 + jnp.flip(y_flip, axis=1)) / 2

    assert out.shape == (B, Dout)
    assert jnp.allclose(out, ref, atol=1e-4, rtol=1e-4)

    # export_mode=True path: plain internal model.
    out_exp = jax.block_until_ready(
        rotation_wrapper_forward(x, params, export_mode=True))
    assert out_exp.shape == (B, Dout)
    assert jnp.allclose(out_exp, y0, atol=1e-4, rtol=1e-4)

    print("KERNEL_OK")
</pallas_src>

<mosaic_0001>
module attributes {stable_mosaic.version = 11 : i64} {
  func.func @_linear_single_kernel(%arg0: i32, %arg1: memref<8x1024xf32, #tpu.memory_space<vmem>>, %arg2: memref<1024x256xf32, #tpu.memory_space<vmem>>, %arg3: memref<1x256xf32, #tpu.memory_space<vmem>>, %arg4: memref<8x256xf32, #tpu.memory_space<vmem>>) attributes {dimension_semantics = [#tpu.dimension_semantics<arbitrary>], iteration_bounds = array<i64: 1>, scalar_prefetch = 0 : i64, scratch_operands = 0 : i64, tpu.core_type = #tpu.core_type<tc>, window_params = [{pipeline_mode = #tpu.pipeline_mode<synchronous>, transform_indices = @transform_0, window_bounds = array<i64: 8, 1024>}, {pipeline_mode = #tpu.pipeline_mode<synchronous>, transform_indices = @transform_1, window_bounds = array<i64: 1024, 256>}, {pipeline_mode = #tpu.pipeline_mode<synchronous>, transform_indices = @transform_2, window_bounds = array<i64: 1, 256>}, {pipeline_mode = #tpu.pipeline_mode<synchronous>, transform_indices = @transform_3, window_bounds = array<i64: 8, 256>}]} {
    %c0 = arith.constant 0 : index
    %c0_0 = arith.constant 0 : index
    %0 = vector.load %arg1[%c0, %c0_0] : memref<8x1024xf32, #tpu.memory_space<vmem>>, vector<8x1024xf32>
    %c0_1 = arith.constant 0 : index
    %c0_2 = arith.constant 0 : index
    %1 = vector.load %arg2[%c0_1, %c0_2] : memref<1024x256xf32, #tpu.memory_space<vmem>>, vector<1024x256xf32>
    %cst = arith.constant dense<0.000000e+00> : vector<8x256xf32>
    %2 = tpu.matmul %0, %1, %cst {dimension_numbers = #tpu.dot_dimension_numbers<[1], [0], [0], [1], [0, 0, 1, 1], [], []>} : vector<8x1024xf32>, vector<1024x256xf32>, vector<8x256xf32> -> vector<8x256xf32>
    %c0_3 = arith.constant 0 : index
    %c0_4 = arith.constant 0 : index
    %3 = vector.load %arg3[%c0_3, %c0_4] : memref<1x256xf32, #tpu.memory_space<vmem>>, vector<1x256xf32>
    %4 = vector.broadcast %3 : vector<1x256xf32> to vector<8x256xf32>
    %5 = arith.addf %2, %4 : vector<8x256xf32>
    %c0_5 = arith.constant 0 : index
    %c0_6 = arith.constant 0 : index
    %6 = vector.load %arg4[%c0_5, %c0_6] : memref<8x256xf32, #tpu.memory_space<vmem>>, vector<8x256xf32>
    tpu.vector_store %arg4[%c0_5, %c0_6], %5 {strides = array<i32>} : memref<8x256xf32, #tpu.memory_space<vmem>>, vector<8x256xf32>,
    return
  }
  func.func @transform_0(%arg0: i32) -> (i32, i32) {
    %c0_i32 = arith.constant 0 : i32
    %c0_i32_0 = arith.constant 0 : i32
    %c0_i32_1 = arith.constant 0 : i32
    return %c0_i32, %c0_i32_0 : i32, i32
  }
  func.func @transform_1(%arg0: i32) -> (i32, i32) {
    %c0_i32 = arith.constant 0 : i32
    %c0_i32_0 = arith.constant 0 : i32
    %c0_i32_1 = arith.constant 0 : i32
    return %c0_i32, %c0_i32_0 : i32, i32
  }
  func.func @transform_2(%arg0: i32) -> (i32, i32) {
    %c0_i32 = arith.constant 0 : i32
    %c0_i32_0 = arith.constant 0 : i32
    %c0_i32_1 = arith.constant 0 : i32
    return %c0_i32, %c0_i32_0 : i32, i32
  }
  func.func @transform_3(%arg0: i32) -> (i32, i32) {
    %c0_i32 = arith.constant 0 : i32
    %c0_i32_0 = arith.constant 0 : i32
    %c0_i32_1 = arith.constant 0 : i32
    return %c0_i32, %c0_i32_0 : i32, i32
  }
}

</mosaic_0001>

<bundles_post_ra>
// kernel: rotation_wrapper_forward.1
= control target key start
LH: loop header
LB: loop body
LE: loop exit
PB: predicated region body
PF: predicated region fallthrough
CT: control target
= control target key end

     0   :  { %8 = vsyncpa [#allocation3], 0  ;;  %s656_s15 = smov [#allocation2]   ;;  %s657_s17 = smov 256   ;;  %s747_s0 = inlined_call_operand.vmem [shape: f32[8,1024], index: 0, kind: input, shape index: {}]   ;;  %s748_s1 = inlined_call_operand.hbm [shape: f32[1024,256], index: 1, kind: input, shape index: {}]   ;;  %s749_s2 = inlined_call_operand.vmem [shape: f32[1,256], index: 2, kind: input, shape index: {}]   ;;  %s750_s3 = inlined_call_operand.vmem [shape: f32[8,256], index: 3, kind: output, shape index: {}]  }
   0x1   :  { %s15_s14 = sshll.u32 %s748_s1, 4  ;;  %s17_s16 = sshll.u32 %s656_s15, 4  ;;  %s16_s14 = int_to_ptr.hbm [resolvable:$true] %s15_s14  ;;  %s18_s16 = int_to_ptr.vmem [resolvable:$true] %s17_s16 }
   0x2   :  { %s658_s18 = smov 16  }
   0x3   :  { %23 = dma.hbm_to_vmem [thread:$0]  %s16_s14, 32768, %s18_s16, [#allocation3], %s657_s17, %s657_s17, %s658_s18  }
   0x4   :  { %654 = dma.done.wait [#allocation3], 32768  }
   0x5   :  { %655 = vsyncadd [#allocation3], 4294934528  ;;  %v132_v0 = vld [vmem:[#allocation2 + $0x2f0] sm:$0xff]  ;;  %v130_v2 = vld [vmem:[#allocation2 + $0x2e0] sm:$0xff] }
   0x6   :  { %v68_v1 = vld [vmem:[#allocation2 + $0xf0] sm:$0xff]  ;;  %340 = vmatpush.msra.mxu2 %v132_v0  ;;  %v66_v4 = vld [vmem:[#allocation2 + $0xe0] sm:$0xff] }
   0x7   :  { %300 = vmatpush.msra.mxu0 %v68_v1  ;;  %v164_v3 = vld [vmem:[#allocation2 + $0x3f0] sm:$0xff]  ;;  %v162_v7 = vld [vmem:[#allocation2 + $0x3e0] sm:$0xff] }
   0x8   :  { %v100_v5 = vld [vmem:[#allocation2 + $0x1f0] sm:$0xff]  ;;  %360 = vmatpush.msra.mxu3 %v164_v3  ;;  %341 = vmatpush.msra.mxu2 %v130_v2  ;;  %v98_v9 = vld [vmem:[#allocation2 + $0x1e0] sm:$0xff] }
   0x9   :  { %320 = vmatpush.msra.mxu1 %v100_v5  ;;  %v128_v6 = vld [vmem:[#allocation2 + $0x2d0] sm:$0xff]  ;;  %301 = vmatpush.msra.mxu0 %v66_v4  ;;  %v126_v11 = vld [vmem:[#allocation2 + $0x2c0] sm:$0xff] }
   0xa   :  { %v64_v8 = vld [vmem:[#allocation2 + $0xd0] sm:$0xff]  ;;  %361 = vmatpush.msra.mxu3 %v162_v7  ;;  %v62_v12 = vld [vmem:[#allocation2 + $0xc0] sm:$0xff]  ;;  %342 = vmatpush.msra.mxu2 %v128_v6 }
   0xb   :  { %v160_v10 = vld [vmem:[#allocation2 + $0x3d0] sm:$0xff]  ;;  %321 = vmatpush.msra.mxu1 %v98_v9  ;;  %302 = vmatpush.msra.mxu0 %v64_v8  ;;  %v158_v14 = vld [vmem:[#allocation2 + $0x3c0] sm:$0xff] }
   0xc   :  { %v96_v13 = vld [vmem:[#allocation2 + $0x1d0] sm:$0xff]  ;;  %v94_v15 = vld [vmem:[#allocation2 + $0x1c0] sm:$0xff]  ;;  %362 = vmatpush.msra.mxu3 %v160_v10  ;;  %343 = vmatpush.msra.mxu2 %v126_v11 }
   0xd   :  { %322 = vmatpush.msra.mxu1 %v96_v13  ;;  %v124_v16 = vld [vmem:[#allocation2 + $0x2b0] sm:$0xff]  ;;  %303 = vmatpush.msra.mxu0 %v62_v12  ;;  %v122_v20 = vld [vmem:[#allocation2 + $0x2a0] sm:$0xff] }
   0xe   :  { %v60_v17 = vld [vmem:[#allocation2 + $0xb0] sm:$0xff]  ;;  %363 = vmatpush.msra.mxu3 %v158_v14  ;;  %v58_v21 = vld [vmem:[#allocation2 + $0xa0] sm:$0xff]  ;;  %344 = vmatpush.msra.mxu2 %v124_v16 }
   0xf   :  { %v156_v18 = vld [vmem:[#allocation2 + $0x3b0] sm:$0xff]  ;;  %323 = vmatpush.msra.mxu1 %v94_v15  ;;  %304 = vmatpush.msra.mxu0 %v60_v17  ;;  %v154_v22 = vld [vmem:[#allocation2 + $0x3a0] sm:$0xff] }
  0x10   :  { %v92_v19 = vld [vmem:[#allocation2 + $0x1b0] sm:$0xff]  ;;  %v90_v23 = vld [vmem:[#allocation2 + $0x1a0] sm:$0xff]  ;;  %364 = vmatpush.msra.mxu3 %v156_v18  ;;  %345 = vmatpush.msra.mxu2 %v122_v20 }
  0x11   :  { %324 = vmatpush.msra.mxu1 %v92_v19  ;;  %v120_v24 = vld [vmem:[#allocation2 + $0x290] sm:$0xff]  ;;  %305 = vmatpush.msra.mxu0 %v58_v21  ;;  %v118_v28 = vld [vmem:[#allocation2 + $0x280] sm:$0xff] }
  0x12   :  { %v56_v25 = vld [vmem:[#allocation2 + $0x90] sm:$0xff]  ;;  %365 = vmatpush.msra.mxu3 %v154_v22  ;;  %v54_v29 = vld [vmem:[#allocation2 + $0x80] sm:$0xff]  ;;  %346 = vmatpush.msra.mxu2 %v120_v24 }
  0x13   :  { %v152_v26 = vld [vmem:[#allocation2 + $0x390] sm:$0xff]  ;;  %325 = vmatpush.msra.mxu1 %v90_v23  ;;  %306 = vmatpush.msra.mxu0 %v56_v25  ;;  %v150_v30 = vld [vmem:[#allocation2 + $0x380] sm:$0xff] }
  0x14   :  { %v88_v27 = vld [vmem:[#allocation2 + $0x190] sm:$0xff]  ;;  %v86_v31 = vld [vmem:[#allocation2 + $0x180] sm:$0xff]  ;;  %366 = vmatpush.msra.mxu3 %v152_v26  ;;  %347 = vmatpush.msra.mxu2 %v118_v28 }
  0x15   :  { %326 = vmatpush.msra.mxu1 %v88_v27  ;;  %v116_v32 = vld [vmem:[#allocation2 + $0x270] sm:$0xff]  ;;  %307 = vmatpush.msra.mxu0 %v54_v29  ;;  %v114_v36 = vld [vmem:[#allocation2 + $0x260] sm:$0xff] }
  0x16   :  { %v52_v33 = vld [vmem:[#allocation2 + $0x70] sm:$0xff]  ;;  %367 = vmatpush.msra.mxu3 %v150_v30  ;;  %v50_v37 = vld [vmem:[#allocation2 + $0x60] sm:$0xff]  ;;  %348 = vmatpush.msra.mxu2 %v116_v32 }
  0x17   :  { %v148_v34 = vld [vmem:[#allocation2 + $0x370] sm:$0xff]  ;;  %327 = vmatpush.msra.mxu1 %v86_v31  ;;  %308 = vmatpush.msra.mxu0 %v52_v33  ;;  %v146_v38 = vld [vmem:[#allocation2 + $0x360] sm:$0xff] }
  0x18   :  { %v84_v35 = vld [vmem:[#allocation2 + $0x170] sm:$0xff]  ;;  %v82_v39 = vld [vmem:[#allocation2 + $0x160] sm:$0xff]  ;;  %368 = vmatpush.msra.mxu3 %v148_v34  ;;  %349 = vmatpush.msra.mxu2 %v114_v36 }
  0x19   :  { %328 = vmatpush.msra.mxu1 %v84_v35  ;;  %v112_v40 = vld [vmem:[#allocation2 + $0x250] sm:$0xff]  ;;  %309 = vmatpush.msra.mxu0 %v50_v37  ;;  %v110_v44 = vld [vmem:[#allocation2 + $0x240] sm:$0xff] }
  0x1a   :  { %v48_v41 = vld [vmem:[#allocation2 + $0x50] sm:$0xff]  ;;  %369 = vmatpush.msra.mxu3 %v146_v38  ;;  %v46_v45 = vld [vmem:[#allocation2 + $0x40] sm:$0xff]  ;;  %350 = vmatpush.msra.mxu2 %v112_v40 }
  0x1b   :  { %v144_v42 = vld [vmem:[#allocation2 + $0x350] sm:$0xff]  ;;  %329 = vmatpush.msra.mxu1 %v82_v39  ;;  %310 = vmatpush.msra.mxu0 %v48_v41  ;;  %v142_v46 = vld [vmem:[#allocation2 + $0x340] sm:$0xff] }
  0x1c   :  { %v80_v43 = vld [vmem:[#allocation2 + $0x150] sm:$0xff]  ;;  %v78_v47 = vld [vmem:[#allocation2 + $0x140] sm:$0xff]  ;;  %370 = vmatpush.msra.mxu3 %v144_v42  ;;  %351 = vmatpush.msra.mxu2 %v110_v44 }
  0x1d   :  { %330 = vmatpush.msra.mxu1 %v80_v43  ;;  %v108_v48 = vld [vmem:[#allocation2 + $0x230] sm:$0xff]  ;;  %311 = vmatpush.msra.mxu0 %v46_v45  ;;  %v106_v52 = vld [vmem:[#allocation2 + $0x220] sm:$0xff] }
  0x1e   :  { %v44_v49 = vld [vmem:[#allocation2 + $0x30] sm:$0xff]  ;;  %371 = vmatpush.msra.mxu3 %v142_v46  ;;  %v42_v53 = vld [vmem:[#allocation2 + $0x20] sm:$0xff]  ;;  %352 = vmatpush.msra.mxu2 %v108_v48 }
  0x1f   :  { %v140_v50 = vld [vmem:[#allocation2 + $0x330] sm:$0xff]  ;;  %331 = vmatpush.msra.mxu1 %v78_v47  ;;  %312 = vmatpush.msra.mxu0 %v44_v49  ;;  %v138_v54 = vld [vmem:[#allocation2 + $0x320] sm:$0xff] }
  0x20   :  { %v76_v51 = vld [vmem:[#allocation2 + $0x130] sm:$0xff]  ;;  %v74_v55 = vld [vmem:[#allocation2 + $0x120] sm:$0xff]  ;;  %372 = vmatpush.msra.mxu3 %v140_v50  ;;  %353 = vmatpush.msra.mxu2 %v106_v52 }
  0x21   :  { %332 = vmatpush.msra.mxu1 %v76_v51  ;;  %v104_v56 = vld [vmem:[#allocation2 + $0x210] sm:$0xff]  ;;  %313 = vmatpush.msra.mxu0 %v42_v53  ;;  %v102_v60 = vld [vmem:[#allocation2 + $0x200] sm:$0xff] }
  0x22   :  { %v40_v57 = vld [vmem:[#allocation2 + $0x10] sm:$0xff]  ;;  %373 = vmatpush.msra.mxu3 %v138_v54  ;;  %v38_v61 = vld [vmem:[#allocation2] sm:$0xff]  ;;  %354 = vmatpush.msra.mxu2 %v104_v56 }
  0x23   :  { %v136_v58 = vld [vmem:[#allocation2 + $0x310] sm:$0xff]  ;;  %333 = vmatpush.msra.mxu1 %v74_v55  ;;  %314 = vmatpush.msra.mxu0 %v40_v57  ;;  %v134_v63 = vld [vmem:[#allocation2 + $0x300] sm:$0xff] }
  0x24   :  { %v72_v59 = vld [vmem:[#allocation2 + $0x110] sm:$0xff]  ;;  %374 = vmatpush.msra.mxu3 %v136_v58  ;;  %355 = vmatpush.msra.mxu2 %v102_v60  ;;  %v258_v2 = vld [vmem:[#allocation2 + $0x6e0] sm:$0xff] }
  0x25   :  { %v260_v62 = vld [vmem:[#allocation2 + $0x6f0] sm:$0xff]  ;;  %334 = vmatpush.msra.mxu1 %v72_v59  ;;  %315 = vmatpush.msra.mxu0 %v38_v61  ;;  %v70_v3 = vld [vmem:[#allocation2 + $0x100] sm:$0xff] }
  0x26   :  { %v196_v0 = vld [vmem:[#allocation2 + $0x4f0] sm:$0xff]  ;;  %420 = vmatpush.msrb.mxu2 %v260_v62  ;;  %375 = vmatpush.msra.mxu3 %v134_v63  ;;  %v194_v4 = vld [vmem:[#allocation2 + $0x4e0] sm:$0xff]  ;;  %v133_v62 = vld [vmem:[#allocation2 + $0x2f8] sm:$0xff] }
  0x27   :  { %v292_v1 = vld [vmem:[#allocation2 + $0x7f0] sm:$0xff]  ;;  %380 = vmatpush.msrb.mxu0 %v196_v0  ;;  %v290_v7 = vld [vmem:[#allocation2 + $0x7e0] sm:$0xff]  ;;  %335 = vmatpush.msra.mxu1 %v70_v3  ;;  %v69_v3 = vld [vmem:[#allocation2 + $0xf8] sm:$0xff] }
  0x28   :  { %v228_v5 = vld [vmem:[#allocation2 + $0x5f0] sm:$0xff]  ;;  %440 = vmatpush.msrb.mxu3 %v292_v1  ;;  %421 = vmatpush.msrb.mxu2 %v258_v2  ;;  %v226_v9 = vld [vmem:[#allocation2 + $0x5e0] sm:$0xff]  ;;  %v696_v2 = vld [vmem:[%s747_s0 + $0x18] sm:$0xff] }
  0x29   :  { %v256_v6 = vld [vmem:[#allocation2 + $0x6d0] sm:$0xff]  ;;  %381 = vmatpush.msrb.mxu0 %v194_v4  ;;  %400 = vmatpush.msrb.mxu1 %v228_v5  ;;  %v254_v10 = vld [vmem:[#allocation2 + $0x6c0] sm:$0xff]  ;;  %v131_v4 = vld [vmem:[#allocation2 + $0x2e8] sm:$0xff] }
  0x2a   :  { %v192_v8 = vld [vmem:[#allocation2 + $0x4d0] sm:$0xff]  ;;  %422 = vmatpush.msrb.mxu2 %v256_v6  ;;  %441 = vmatpush.msrb.mxu3 %v290_v7  ;;  %v190_v12 = vld [vmem:[#allocation2 + $0x4c0] sm:$0xff]  ;;  %v165_v5 = vld [vmem:[#allocation2 + $0x3f8] sm:$0xff] }
  0x2b   :  { %v288_v11 = vld [vmem:[#allocation2 + $0x7d0] sm:$0xff]  ;;  %382 = vmatpush.msrb.mxu0 %v192_v8  ;;  %401 = vmatpush.msrb.mxu1 %v226_v9  ;;  %v286_v15 = vld [vmem:[#allocation2 + $0x7c0] sm:$0xff]  ;;  %v67_v7 = vld [vmem:[#allocation2 + $0xe8] sm:$0xff] }
  0x2c   :  { %v224_v13 = vld [vmem:[#allocation2 + $0x5d0] sm:$0xff]  ;;  %423 = vmatpush.msrb.mxu2 %v254_v10  ;;  %442 = vmatpush.msrb.mxu3 %v288_v11  ;;  %v222_v17 = vld [vmem:[#allocation2 + $0x5c0] sm:$0xff]  ;;  %v703_v8 = vld [vmem:[%s747_s0 + $0x8] sm:$0xff] }
  0x2d   :  { %v252_v14 = vld [vmem:[#allocation2 + $0x6b0] sm:$0xff]  ;;  %383 = vmatpush.msrb.mxu0 %v190_v12  ;;  %402 = vmatpush.msrb.mxu1 %v224_v13  ;;  %v250_v18 = vld [vmem:[#allocation2 + $0x6a0] sm:$0xff]  ;;  %v129_v9 = vld [vmem:[#allocation2 + $0x2d8] sm:$0xff] }
  0x2e   :  { %v188_v16 = vld [vmem:[#allocation2 + $0x4b0] sm:$0xff]  ;;  %424 = vmatpush.msrb.mxu2 %v252_v14  ;;  %443 = vmatpush.msrb.mxu3 %v286_v15  ;;  %v186_v20 = vld [vmem:[#allocation2 + $0x4a0] sm:$0xff]  ;;  %v101_v10 = vld [vmem:[#allocation2 + $0x1f8] sm:$0xff] }
  0x2f   :  { %v284_v19 = vld [vmem:[#allocation2 + $0x7b0] sm:$0xff]  ;;  %384 = vmatpush.msrb.mxu0 %v188_v16  ;;  %403 = vmatpush.msrb.mxu1 %v222_v17  ;;  %v282_v23 = vld [vmem:[#allocation2 + $0x7a0] sm:$0xff]  ;;  %v163_v11 = vld [vmem:[#allocation2 + $0x3e8] sm:$0xff] }
  0x30   :  { %v220_v21 = vld [vmem:[#allocation2 + $0x5b0] sm:$0xff]  ;;  %425 = vmatpush.msrb.mxu2 %v250_v18  ;;  %444 = vmatpush.msrb.mxu3 %v284_v19  ;;  %v218_v25 = vld [vmem:[#allocation2 + $0x5a0] sm:$0xff]  ;;  %v65_v12 = vld [vmem:[#allocation2 + $0xd8] sm:$0xff] }
  0x31   :  { %v248_v22 = vld [vmem:[#allocation2 + $0x690] sm:$0xff]  ;;  %385 = vmatpush.msrb.mxu0 %v186_v20  ;;  %404 = vmatpush.msrb.mxu1 %v220_v21  ;;  %v246_v26 = vld [vmem:[#allocation2 + $0x680] sm:$0xff]  ;;  %v127_v13 = vld [vmem:[#allocation2 + $0x2c8] sm:$0xff] }
  0x32   :  { %v184_v24 = vld [vmem:[#allocation2 + $0x490] sm:$0xff]  ;;  %426 = vmatpush.msrb.mxu2 %v248_v22  ;;  %445 = vmatpush.msrb.mxu3 %v282_v23  ;;  %v182_v28 = vld [vmem:[#allocation2 + $0x480] sm:$0xff]  ;;  %v99_v14 = vld [vmem:[#allocation2 + $0x1e8] sm:$0xff] }
  0x33   :  { %v280_v27 = vld [vmem:[#allocation2 + $0x790] sm:$0xff]  ;;  %386 = vmatpush.msrb.mxu0 %v184_v24  ;;  %405 = vmatpush.msrb.mxu1 %v218_v25  ;;  %v278_v31 = vld [vmem:[#allocation2 + $0x780] sm:$0xff]  ;;  %v161_v15 = vld [vmem:[#allocation2 + $0x3d8] sm:$0xff] }
  0x34   :  { %v216_v29 = vld [vmem:[#allocation2 + $0x590] sm:$0xff]  ;;  %427 = vmatpush.msrb.mxu2 %v246_v26  ;;  %446 = vmatpush.msrb.mxu3 %v280_v27  ;;  %v214_v33 = vld [vmem:[#allocation2 + $0x580] sm:$0xff]  ;;  %v63_v17 = vld [vmem:[#allocation2 + $0xc8] sm:$0xff] }
  0x35   :  { %v244_v30 = vld [vmem:[#allocation2 + $0x670] sm:$0xff]  ;;  %387 = vmatpush.msrb.mxu0 %v182_v28  ;;  %406 = vmatpush.msrb.mxu1 %v216_v29  ;;  %v242_v34 = vld [vmem:[#allocation2 + $0x660] sm:$0xff]  ;;  %v97_v18 = vld [vmem:[#allocation2 + $0x1d8] sm:$0xff] }
  0x36   :  { %v180_v32 = vld [vmem:[#allocation2 + $0x470] sm:$0xff]  ;;  %428 = vmatpush.msrb.mxu2 %v244_v30  ;;  %447 = vmatpush.msrb.mxu3 %v278_v31  ;;  %v178_v36 = vld [vmem:[#allocation2 + $0x460] sm:$0xff]  ;;  %v125_v19 = vld [vmem:[#allocation2 + $0x2b8] sm:$0xff] }
  0x37   :  { %v276_v35 = vld [vmem:[#allocation2 + $0x770] sm:$0xff]  ;;  %388 = vmatpush.msrb.mxu0 %v180_v32  ;;  %407 = vmatpush.msrb.mxu1 %v214_v33  ;;  %v274_v39 = vld [vmem:[#allocation2 + $0x760] sm:$0xff]  ;;  %v159_v20 = vld [vmem:[#allocation2 + $0x3c8] sm:$0xff] }
  0x38   :  { %v212_v37 = vld [vmem:[#allocation2 + $0x570] sm:$0xff]  ;;  %429 = vmatpush.msrb.mxu2 %v242_v34  ;;  %448 = vmatpush.msrb.mxu3 %v276_v35  ;;  %v210_v41 = vld [vmem:[#allocation2 + $0x560] sm:$0xff]  ;;  %v720_v22 = vld [vmem:[%s747_s0 + $0x38] sm:$0xff] }
  0x39   :  { %v240_v38 = vld [vmem:[#allocation2 + $0x650] sm:$0xff]  ;;  %389 = vmatpush.msrb.mxu0 %v178_v36  ;;  %408 = vmatpush.msrb.mxu1 %v212_v37  ;;  %v238_v42 = vld [vmem:[#allocation2 + $0x640] sm:$0xff]  ;;  %v61_v23 = vld [vmem:[#allocation2 + $0xb8] sm:$0xff] }
  0x3a   :  { %v176_v40 = vld [vmem:[#allocation2 + $0x450] sm:$0xff]  ;;  %430 = vmatpush.msrb.mxu2 %v240_v38  ;;  %449 = vmatpush.msrb.mxu3 %v274_v39  ;;  %v174_v44 = vld [vmem:[#allocation2 + $0x440] sm:$0xff]  ;;  %v95_v24 = vld [vmem:[#allocation2 + $0x1c8] sm:$0xff] }
  0x3b   :  { %v272_v43 = vld [vmem:[#allocation2 + $0x750] sm:$0xff]  ;;  %390 = vmatpush.msrb.mxu0 %v176_v40  ;;  %409 = vmatpush.msrb.mxu1 %v210_v41  ;;  %v270_v47 = vld [vmem:[#allocation2 + $0x740] sm:$0xff]  ;;  %v123_v25 = vld [vmem:[#allocation2 + $0x2a8] sm:$0xff] }
  0x3c   :  { %v208_v45 = vld [vmem:[#allocation2 + $0x550] sm:$0xff]  ;;  %431 = vmatpush.msrb.mxu2 %v238_v42  ;;  %450 = vmatpush.msrb.mxu3 %v272_v43  ;;  %v206_v49 = vld [vmem:[#allocation2 + $0x540] sm:$0xff]  ;;  %v157_v26 = vld [vmem:[#allocation2 + $0x3b8] sm:$0xff] }
  0x3d   :  { %v236_v46 = vld [vmem:[#allocation2 + $0x630] sm:$0xff]  ;;  %391 = vmatpush.msrb.mxu0 %v174_v44  ;;  %410 = vmatpush.msrb.mxu1 %v208_v45  ;;  %v234_v50 = vld [vmem:[#allocation2 + $0x620] sm:$0xff]  ;;  %v726_v27 = vld [vmem:[%s747_s0 + $0x28] sm:$0xff] }
  0x3e   :  { %v172_v48 = vld [vmem:[#allocation2 + $0x430] sm:$0xff]  ;;  %432 = vmatpush.msrb.mxu2 %v236_v46  ;;  %451 = vmatpush.msrb.mxu3 %v270_v47  ;;  %v170_v52 = vld [vmem:[#allocation2 + $0x420] sm:$0xff]  ;;  %v59_v28 = vld [vmem:[#allocation2 + $0xa8] sm:$0xff] }
  0x3f   :  { %v268_v51 = vld [vmem:[#allocation2 + $0x730] sm:$0xff]  ;;  %392 = vmatpush.msrb.mxu0 %v172_v48  ;;  %411 = vmatpush.msrb.mxu1 %v206_v49  ;;  %v266_v55 = vld [vmem:[#allocation2 + $0x720] sm:$0xff]  ;;  %v93_v29 = vld [vmem:[#allocation2 + $0x1b8] sm:$0xff] }
  0x40   :  { %v204_v53 = vld [vmem:[#allocation2 + $0x530] sm:$0xff]  ;;  %433 = vmatpush.msrb.mxu2 %v234_v50  ;;  %452 = vmatpush.msrb.mxu3 %v268_v51  ;;  %v202_v57 = vld [vmem:[#allocation2 + $0x520] sm:$0xff]  ;;  %v121_v30 = vld [vmem:[#allocation2 + $0x298] sm:$0xff] }
  0x41   :  { %v232_v54 = vld [vmem:[#allocation2 + $0x610] sm:$0xff]  ;;  %393 = vmatpush.msrb.mxu0 %v170_v52  ;;  %412 = vmatpush.msrb.mxu1 %v204_v53  ;;  %v230_v58 = vld [vmem:[#allocation2 + $0x600] sm:$0xff]  ;;  %v155_v31 = vld [vmem:[#allocation2 + $0x3a8] sm:$0xff] }
  0x42   :  { %v168_v56 = vld [vmem:[#allocation2 + $0x410] sm:$0xff]  ;;  %434 = vmatpush.msrb.mxu2 %v232_v54  ;;  %453 = vmatpush.msrb.mxu3 %v266_v55  ;;  %v166_v61 = vld [vmem:[#allocation2 + $0x400] sm:$0xff]  ;;  %v57_v32 = vld [vmem:[#allocation2 + $0x98] sm:$0xff] }
  0x43   :  { %v264_v59 = vld [vmem:[#allocation2 + $0x710] sm:$0xff]  ;;  %394 = vmatpush.msrb.mxu0 %v168_v56  ;;  %413 = vmatpush.msrb.mxu1 %v202_v57  ;;  %v262_v0 = vld [vmem:[#allocation2 + $0x700] sm:$0xff]  ;;  %v91_v33 = vld [vmem:[#allocation2 + $0x1a8] sm:$0xff] }
  0x44   :  { %v685_v60 = vld [vmem:[%s747_s0 + $0x10] sm:$0xff]  ;;  %435 = vmatpush.msrb.mxu2 %v230_v58  ;;  %454 = vmatpush.msrb.mxu3 %v264_v59  ;;  %v690_v1 = vld [vmem:[%s747_s0] sm:$0xff]  ;;  %v119_v34 = vld [vmem:[#allocation2 + $0x288] sm:$0xff] }
  0x45   :  { %v200_v63 = vld [vmem:[#allocation2 + $0x510] sm:$0xff]  ;;  %356 = vmatmul.f32.vlgmr.msra.gmra.mxu2 %v685_v60  ;;  %395 = vmatpush.msrb.mxu0 %v166_v61  ;;  %v198_v6 = vld [vmem:[#allocation2 + $0x500] sm:$0xff]  ;;  %v153_v35 = vld [vmem:[#allocation2 + $0x398] sm:$0xff] }
  0x46   :  { %500 = vmatpush.msra.mxu2 %v133_v62  ;;  %414 = vmatpush.msrb.mxu1 %v200_v63  ;;  %v709_v16 = vld [vmem:[%s747_s0 + $0x30] sm:$0xff]  ;;  %v714_v21 = vld [vmem:[%s747_s0 + $0x20] sm:$0xff]  ;;  %v55_v36 = vld [vmem:[#allocation2 + $0x88] sm:$0xff] }
  0x47   :  { %455 = vmatpush.msrb.mxu3 %v262_v0  ;;  %316 = vmatmul.f32.vlgmr.msra.gmra.mxu0 %v690_v1  ;;  %v89_v37 = vld [vmem:[#allocation2 + $0x198] sm:$0xff]  ;;  %v151_v39 = vld [vmem:[#allocation2 + $0x388] sm:$0xff] }
  0x48   :  { %376 = vmatmul.f32.vlgmr.msra.gmra.mxu3 %v696_v2  ;;  %460 = vmatpush.msra.mxu0 %v69_v3  ;;  %v117_v38 = vld [vmem:[#allocation2 + $0x278] sm:$0xff]  ;;  %v87_v41 = vld [vmem:[#allocation2 + $0x188] sm:$0xff] }
  0x49   :  { %501 = vmatpush.msra.mxu2 %v131_v4  ;;  %520 = vmatpush.msra.mxu3 %v165_v5  ;;  %v53_v40 = vld [vmem:[#allocation2 + $0x78] sm:$0xff]  ;;  %v115_v42 = vld [vmem:[#allocation2 + $0x268] sm:$0xff] }
  0x4a   :  { %415 = vmatpush.msrb.mxu1 %v198_v6  ;;  %461 = vmatpush.msra.mxu0 %v67_v7  ;;  %v149_v43 = vld [vmem:[#allocation2 + $0x378] sm:$0xff]  ;;  %v51_v44 = vld [vmem:[#allocation2 + $0x68] sm:$0xff] }
  0x4b   :  { %336 = vmatmul.f32.vlgmr.msra.gmra.mxu1 %v703_v8  ;;  %502 = vmatpush.msra.mxu2 %v129_v9  ;;  %v85_v45 = vld [vmem:[#allocation2 + $0x178] sm:$0xff]  ;;  %v147_v47 = vld [vmem:[#allocation2 + $0x368] sm:$0xff] }
  0x4c   :  { %480 = vmatpush.msra.mxu1 %v101_v10  ;;  %521 = vmatpush.msra.mxu3 %v163_v11  ;;  %v113_v46 = vld [vmem:[#allocation2 + $0x258] sm:$0xff]  ;;  %v83_v49 = vld [vmem:[#allocation2 + $0x168] sm:$0xff] }
  0x4d   :  { %462 = vmatpush.msra.mxu0 %v65_v12  ;;  %503 = vmatpush.msra.mxu2 %v127_v13  ;;  %v49_v48 = vld [vmem:[#allocation2 + $0x58] sm:$0xff]  ;;  %v111_v50 = vld [vmem:[#allocation2 + $0x248] sm:$0xff] }
  0x4e   :  { %481 = vmatpush.msra.mxu1 %v99_v14  ;;  %522 = vmatpush.msra.mxu3 %v161_v15  ;;  %v145_v51 = vld [vmem:[#allocation2 + $0x358] sm:$0xff]  ;;  %v47_v52 = vld [vmem:[#allocation2 + $0x48] sm:$0xff] }
  0x4f   :  { %436 = vmatmul.f32.vlgmr.msrb.gmra.mxu2 %v709_v16  ;;  %463 = vmatpush.msra.mxu0 %v63_v17  ;;  %v81_v53 = vld [vmem:[#allocation2 + $0x158] sm:$0xff]  ;;  %v143_v55 = vld [vmem:[#allocation2 + $0x348] sm:$0xff] }
  0x50   :  { %482 = vmatpush.msra.mxu1 %v97_v18  ;;  %504 = vmatpush.msra.mxu2 %v125_v19  ;;  %v109_v54 = vld [vmem:[#allocation2 + $0x238] sm:$0xff]  ;;  %v79_v57 = vld [vmem:[#allocation2 + $0x148] sm:$0xff] }
  0x51   :  { %523 = vmatpush.msra.mxu3 %v159_v20  ;;  %396 = vmatmul.f32.vlgmr.msrb.gmra.mxu0 %v714_v21  ;;  %v45_v56 = vld [vmem:[#allocation2 + $0x38] sm:$0xff]  ;;  %v107_v58 = vld [vmem:[#allocation2 + $0x228] sm:$0xff] }
  0x52   :  { %456 = vmatmul.f32.vlgmr.msrb.gmra.mxu3 %v720_v22  ;;  %464 = vmatpush.msra.mxu0 %v61_v23  ;;  %v141_v59 = vld [vmem:[#allocation2 + $0x338] sm:$0xff]  ;;  %v43_v61 = vld [vmem:[#allocation2 + $0x28] sm:$0xff] }
  0x53   :  { %483 = vmatpush.msra.mxu1 %v95_v24  ;;  %505 = vmatpush.msra.mxu2 %v123_v25  ;;  %v77_v62 = vld [vmem:[#allocation2 + $0x138] sm:$0xff]  ;;  %v139_v0 = vld [vmem:[#allocation2 + $0x328] sm:$0xff] }
  0x54   :  { %524 = vmatpush.msra.mxu3 %v157_v26  ;;  %416 = vmatmul.f32.vlgmr.msrb.gmra.mxu1 %v726_v27  ;;  %v105_v63 = vld [vmem:[#allocation2 + $0x218] sm:$0xff]  ;;  %v75_v4 = vld [vmem:[#allocation2 + $0x128] sm:$0xff] }
  0x55   :  { %465 = vmatpush.msra.mxu0 %v59_v28  ;;  %484 = vmatpush.msra.mxu1 %v93_v29  ;;  %v41_v3 = vld [vmem:[#allocation2 + $0x18] sm:$0xff]  ;;  %v103_v5 = vld [vmem:[#allocation2 + $0x208] sm:$0xff] }
  0x56   :  { %506 = vmatpush.msra.mxu2 %v121_v30  ;;  %525 = vmatpush.msra.mxu3 %v155_v31  ;;  %v137_v6 = vld [vmem:[#allocation2 + $0x318] sm:$0xff]  ;;  %v39_v9 = vld [vmem:[#allocation2 + $0x8] sm:$0xff] }
  0x57   :  { %466 = vmatpush.msra.mxu0 %v57_v32  ;;  %485 = vmatpush.msra.mxu1 %v91_v33  ;;  %v261_v7 = vld [vmem:[#allocation2 + $0x6f8] sm:$0xff]  ;;  %v135_v11 = vld [vmem:[#allocation2 + $0x308] sm:$0xff] }
  0x58   :  { %507 = vmatpush.msra.mxu2 %v119_v34  ;;  %526 = vmatpush.msra.mxu3 %v153_v35  ;;  %v73_v10 = vld [vmem:[#allocation2 + $0x118] sm:$0xff]  ;;  %v259_v13 = vld [vmem:[#allocation2 + $0x6e8] sm:$0xff] }
  0x59   :  { %467 = vmatpush.msra.mxu0 %v55_v36  ;;  %486 = vmatpush.msra.mxu1 %v89_v37  ;;  %v197_v12 = vld [vmem:[#allocation2 + $0x4f8] sm:$0xff]  ;;  %v71_v15 = vld [vmem:[#allocation2 + $0x108] sm:$0xff] }
  0x5a   :  { %508 = vmatpush.msra.mxu2 %v117_v38  ;;  %527 = vmatpush.msra.mxu3 %v151_v39  ;;  %v293_v14 = vld [vmem:[#allocation2 + $0x7f8] sm:$0xff]  ;;  %v195_v17 = vld [vmem:[#allocation2 + $0x4e8] sm:$0xff] }
  0x5b   :  { %468 = vmatpush.msra.mxu0 %v53_v40  ;;  %487 = vmatpush.msra.mxu1 %v87_v41  ;;  %v229_v18 = vld [vmem:[#allocation2 + $0x5f8] sm:$0xff]  ;;  %v291_v20 = vld [vmem:[#allocation2 + $0x7e8] sm:$0xff] }
  0x5c   :  { %509 = vmatpush.msra.mxu2 %v115_v42  ;;  %528 = vmatpush.msra.mxu3 %v149_v43  ;;  %v257_v19 = vld [vmem:[#allocation2 + $0x6d8] sm:$0xff]  ;;  %v227_v24 = vld [vmem:[#allocation2 + $0x5e8] sm:$0xff] }
  0x5d   :  { %469 = vmatpush.msra.mxu0 %v51_v44  ;;  %488 = vmatpush.msra.mxu1 %v85_v45  ;;  %v193_v23 = vld [vmem:[#allocation2 + $0x4d8] sm:$0xff]  ;;  %v255_v25 = vld [vmem:[#allocation2 + $0x6c8] sm:$0xff] }
  0x5e   :  { %510 = vmatpush.msra.mxu2 %v113_v46  ;;  %529 = vmatpush.msra.mxu3 %v147_v47  ;;  %v289_v26 = vld [vmem:[#allocation2 + $0x7d8] sm:$0xff]  ;;  %v191_v28 = vld [vmem:[#allocation2 + $0x4c8] sm:$0xff] }
  0x5f   :  { %470 = vmatpush.msra.mxu0 %v49_v48  ;;  %489 = vmatpush.msra.mxu1 %v83_v49  ;;  %v225_v29 = vld [vmem:[#allocation2 + $0x5d8] sm:$0xff]  ;;  %v287_v31 = vld [vmem:[#allocation2 + $0x7c8] sm:$0xff] }
  0x60   :  { %511 = vmatpush.msra.mxu2 %v111_v50  ;;  %530 = vmatpush.msra.mxu3 %v145_v51  ;;  %v253_v30 = vld [vmem:[#allocation2 + $0x6b8] sm:$0xff]  ;;  %v223_v33 = vld [vmem:[#allocation2 + $0x5c8] sm:$0xff] }
  0x61   :  { %471 = vmatpush.msra.mxu0 %v47_v52  ;;  %490 = vmatpush.msra.mxu1 %v81_v53  ;;  %v189_v32 = vld [vmem:[#allocation2 + $0x4b8] sm:$0xff]  ;;  %v251_v34 = vld [vmem:[#allocation2 + $0x6a8] sm:$0xff] }
  0x62   :  { %512 = vmatpush.msra.mxu2 %v109_v54  ;;  %531 = vmatpush.msra.mxu3 %v143_v55  ;;  %v285_v35 = vld [vmem:[#allocation2 + $0x7b8] sm:$0xff]  ;;  %v187_v36 = vld [vmem:[#allocation2 + $0x4a8] sm:$0xff] }
  0x63   :  { %472 = vmatpush.msra.mxu0 %v45_v56  ;;  %491 = vmatpush.msra.mxu1 %v79_v57  ;;  %v221_v37 = vld [vmem:[#allocation2 + $0x5b8] sm:$0xff]  ;;  %v283_v39 = vld [vmem:[#allocation2 + $0x7a8] sm:$0xff] }
  0x64   :  { %513 = vmatpush.msra.mxu2 %v107_v58  ;;  %532 = vmatpush.msra.mxu3 %v141_v59  ;;  %v249_v38 = vld [vmem:[#allocation2 + $0x698] sm:$0xff]  ;;  %v219_v41 = vld [vmem:[#allocation2 + $0x5a8] sm:$0xff] }
  0x65   :  { %473 = vmatpush.msra.mxu0 %v43_v61  ;;  %492 = vmatpush.msra.mxu1 %v77_v62  ;;  %v185_v40 = vld [vmem:[#allocation2 + $0x498] sm:$0xff]  ;;  %v247_v42 = vld [vmem:[#allocation2 + $0x688] sm:$0xff] }
  0x66   :  { %514 = vmatpush.msra.mxu2 %v105_v63  ;;  %533 = vmatpush.msra.mxu3 %v139_v0  ;;  %v281_v43 = vld [vmem:[#allocation2 + $0x798] sm:$0xff]  ;;  %v183_v44 = vld [vmem:[#allocation2 + $0x488] sm:$0xff] }
  0x67   :  { %474 = vmatpush.msra.mxu0 %v41_v3  ;;  %493 = vmatpush.msra.mxu1 %v75_v4  ;;  %v217_v45 = vld [vmem:[#allocation2 + $0x598] sm:$0xff]  ;;  %v279_v47 = vld [vmem:[#allocation2 + $0x788] sm:$0xff] }
  0x68   :  { %515 = vmatpush.msra.mxu2 %v103_v5  ;;  %534 = vmatpush.msra.mxu3 %v137_v6  ;;  %v245_v46 = vld [vmem:[#allocation2 + $0x678] sm:$0xff]  ;;  %v215_v49 = vld [vmem:[#allocation2 + $0x588] sm:$0xff] }
  0x69   :  { %475 = vmatpush.msra.mxu0 %v39_v9  ;;  %494 = vmatpush.msra.mxu1 %v73_v10  ;;  %v181_v48 = vld [vmem:[#allocation2 + $0x478] sm:$0xff]  ;;  %v243_v50 = vld [vmem:[#allocation2 + $0x668] sm:$0xff] }
  0x6a   :  { %580 = vmatpush.msrb.mxu2 %v261_v7  ;;  %535 = vmatpush.msra.mxu3 %v135_v11  ;;  %v277_v51 = vld [vmem:[#allocation2 + $0x778] sm:$0xff]  ;;  %v179_v52 = vld [vmem:[#allocation2 + $0x468] sm:$0xff] }
  0x6b   :  { %540 = vmatpush.msrb.mxu0 %v197_v12  ;;  %495 = vmatpush.msra.mxu1 %v71_v15  ;;  %v213_v53 = vld [vmem:[#allocation2 + $0x578] sm:$0xff]  ;;  %v275_v55 = vld [vmem:[#allocation2 + $0x768] sm:$0xff] }
  0x6c   :  { %581 = vmatpush.msrb.mxu2 %v259_v13  ;;  %600 = vmatpush.msrb.mxu3 %v293_v14  ;;  %v241_v54 = vld [vmem:[#allocation2 + $0x658] sm:$0xff]  ;;  %v211_v57 = vld [vmem:[#allocation2 + $0x568] sm:$0xff] }
  0x6d   :  { %541 = vmatpush.msrb.mxu0 %v195_v17  ;;  %560 = vmatpush.msrb.mxu1 %v229_v18  ;;  %v177_v56 = vld [vmem:[#allocation2 + $0x458] sm:$0xff]  ;;  %v239_v58 = vld [vmem:[#allocation2 + $0x648] sm:$0xff] }
  0x6e   :  { %582 = vmatpush.msrb.mxu2 %v257_v19  ;;  %601 = vmatpush.msrb.mxu3 %v291_v20  ;;  %v273_v59 = vld [vmem:[#allocation2 + $0x758] sm:$0xff]  ;;  %v175_v61 = vld [vmem:[#allocation2 + $0x448] sm:$0xff] }
  0x6f   :  { %542 = vmatpush.msrb.mxu0 %v193_v23  ;;  %561 = vmatpush.msrb.mxu1 %v227_v24  ;;  %v209_v62 = vld [vmem:[#allocation2 + $0x558] sm:$0xff]  ;;  %v271_v0 = vld [vmem:[#allocation2 + $0x748] sm:$0xff] }
  0x70   :  { %583 = vmatpush.msrb.mxu2 %v255_v25  ;;  %602 = vmatpush.msrb.mxu3 %v289_v26  ;;  %v237_v63 = vld [vmem:[#allocation2 + $0x638] sm:$0xff]  ;;  %v207_v4 = vld [vmem:[#allocation2 + $0x548] sm:$0xff] }
  0x71   :  { %543 = vmatpush.msrb.mxu0 %v191_v28  ;;  %562 = vmatpush.msrb.mxu1 %v225_v29  ;;  %v173_v3 = vld [vmem:[#allocation2 + $0x438] sm:$0xff]  ;;  %v235_v5 = vld [vmem:[#allocation2 + $0x628] sm:$0xff] }
  0x72   :  { %584 = vmatpush.msrb.mxu2 %v253_v30  ;;  %603 = vmatpush.msrb.mxu3 %v287_v31  ;;  %v269_v6 = vld [vmem:[#allocation2 + $0x738] sm:$0xff]  ;;  %v171_v7 = vld [vmem:[#allocation2 + $0x428] sm:$0xff] }
  0x73   :  { %544 = vmatpush.msrb.mxu0 %v189_v32  ;;  %563 = vmatpush.msrb.mxu1 %v223_v33  ;;  %v205_v9 = vld [vmem:[#allocation2 + $0x538] sm:$0xff]  ;;  %v267_v11 = vld [vmem:[#allocation2 + $0x728] sm:$0xff] }
  0x74   :  { %585 = vmatpush.msrb.mxu2 %v251_v34  ;;  %604 = vmatpush.msrb.mxu3 %v285_v35  ;;  %v233_v10 = vld [vmem:[#allocation2 + $0x618] sm:$0xff]  ;;  %v203_v12 = vld [vmem:[#allocation2 + $0x528] sm:$0xff] }
  0x75   :  { %545 = vmatpush.msrb.mxu0 %v187_v36  ;;  %564 = vmatpush.msrb.mxu1 %v221_v37  ;;  %v231_v13 = vld [vmem:[#allocation2 + $0x608] sm:$0xff]  ;;  %v265_v14 = vld [vmem:[#allocation2 + $0x718] sm:$0xff] }
  0x76   :  { %586 = vmatpush.msrb.mxu2 %v249_v38  ;;  %605 = vmatpush.msrb.mxu3 %v283_v39  ;;  %v263_v15 = vld [vmem:[#allocation2 + $0x708] sm:$0xff] }
  0x77   :  { %546 = vmatpush.msrb.mxu0 %v185_v40  ;;  %565 = vmatpush.msrb.mxu1 %v219_v41  ;;  %v199_v17 = vld [vmem:[#allocation2 + $0x508] sm:$0xff] }
  0x78   :  { %587 = vmatpush.msrb.mxu2 %v247_v42  ;;  %606 = vmatpush.msrb.mxu3 %v281_v43 }
  0x79   :  { %547 = vmatpush.msrb.mxu0 %v183_v44  ;;  %566 = vmatpush.msrb.mxu1 %v217_v45 }
  0x7a   :  { %588 = vmatpush.msrb.mxu2 %v245_v46  ;;  %607 = vmatpush.msrb.mxu3 %v279_v47 }
  0x7b   :  { %548 = vmatpush.msrb.mxu0 %v181_v48  ;;  %567 = vmatpush.msrb.mxu1 %v215_v49 }
  0x7c   :  { %589 = vmatpush.msrb.mxu2 %v243_v50  ;;  %608 = vmatpush.msrb.mxu3 %v277_v51 }
  0x7d   :  { %549 = vmatpush.msrb.mxu0 %v179_v52  ;;  %568 = vmatpush.msrb.mxu1 %v213_v53 }
  0x7e   :  { %590 = vmatpush.msrb.mxu2 %v241_v54  ;;  %609 = vmatpush.msrb.mxu3 %v275_v55 }
  0x7f   :  { %550 = vmatpush.msrb.mxu0 %v177_v56  ;;  %569 = vmatpush.msrb.mxu1 %v211_v57 }
  0x80   :  { %591 = vmatpush.msrb.mxu2 %v239_v58  ;;  %610 = vmatpush.msrb.mxu3 %v273_v59 }
  0x81   :  { %516 = vmatmul.f32.vlgmr.msra.gmra.mxu2 %v685_v60  ;;  %551 = vmatpush.msrb.mxu0 %v175_v61  ;;  %v169_v60 = vld [vmem:[#allocation2 + $0x418] sm:$0xff] }
  0x82   :  { %570 = vmatpush.msrb.mxu1 %v209_v62  ;;  %592 = vmatpush.msrb.mxu2 %v237_v63 }
  0x83   :  { %611 = vmatpush.msrb.mxu3 %v271_v0  ;;  %476 = vmatmul.f32.vlgmr.msra.gmra.mxu0 %v690_v1  ;;  %v167_v1 = vld [vmem:[#allocation2 + $0x408] sm:$0xff] }
  0x84   :  { %536 = vmatmul.f32.vlgmr.msra.gmra.mxu3 %v696_v2  ;;  %552 = vmatpush.msrb.mxu0 %v173_v3  ;;  %v201_v2 = vld [vmem:[#allocation2 + $0x518] sm:$0xff] }
  0x85   :  { %571 = vmatpush.msrb.mxu1 %v207_v4  ;;  %593 = vmatpush.msrb.mxu2 %v235_v5 }
  0x86   :  { %612 = vmatpush.msrb.mxu3 %v269_v6  ;;  %496 = vmatmul.f32.vlgmr.msra.gmra.mxu1 %v703_v8  ;;  %v294_v8 = vld [vmem:[%s749_s2] sm:$0x3] }
  0x87   :  { %553 = vmatpush.msrb.mxu0 %v171_v7  ;;  %572 = vmatpush.msrb.mxu1 %v205_v9  ;;  %v296_v18 = vperm.slane %v294_v8, 0  ;;  %v297_v34 = vperm.slane %v294_v8, 1 }
  0x88   :  { %594 = vmatpush.msrb.mxu2 %v233_v10  ;;  %613 = vmatpush.msrb.mxu3 %v267_v11 }
  0x89   :  { %554 = vmatpush.msrb.mxu0 %v169_v60  ;;  %573 = vmatpush.msrb.mxu1 %v203_v12 }
  0x8a   :  { %595 = vmatpush.msrb.mxu2 %v231_v13  ;;  %614 = vmatpush.msrb.mxu3 %v265_v14 }
  0x8b   :  { %596 = vmatmul.f32.vlgmr.msrb.gmra.mxu2 %v709_v16  ;;  %555 = vmatpush.msrb.mxu0 %v167_v1 }
  0x8c   :  { %574 = vmatpush.msrb.mxu1 %v201_v2  ;;  %615 = vmatpush.msrb.mxu3 %v263_v15 }
  0x8d   :  { %556 = vmatmul.f32.vlgmr.msrb.gmra.mxu0 %v714_v21  ;;  %616 = vmatmul.f32.vlgmr.msrb.gmra.mxu3 %v720_v22 }
  0x8e   :  { %575 = vmatpush.msrb.mxu1 %v199_v17 }
  0x8f   :  { %576 = vmatmul.f32.vlgmr.msrb.gmra.mxu1 %v726_v27 }
  0xc4   :  { %v317_v19 = vpop.f32.mrf.mxu0 }
  0xc5   :  { %v318_v20 = vadd.f32 %v317_v19, %v296_v18 }
  0xc8   :  { %v337_v23 = vpop.f32.mrf.mxu1  ;;  %v357_v16 = vpop.f32.mrf.mxu2 }
  0xc9   :  { %v338_v24 = vadd.f32 %v337_v23, %v318_v20 }
  0xcb   :  { %v358_v25 = vadd.f32 %v357_v16, %v338_v24  ;;  %v377_v26 = vpop.f32.mrf.mxu3 }
  0xcd   :  { %v378_v28 = vadd.f32 %v377_v26, %v358_v25 }
  0xce   :  { %v397_v29 = vpop.f32.mrf.mxu0 }
  0xcf   :  { %v398_v21 = vadd.f32 %v397_v29, %v378_v28 }
  0xd1   :  { %v417_v30 = vpop.f32.mrf.mxu1 }
  0xd2   :  { %v418_v22 = vadd.f32 %v417_v30, %v398_v21  ;;  %v437_v31 = vpop.f32.mrf.mxu2 }
  0xd4   :  { %v438_v32 = vadd.f32 %v437_v31, %v418_v22 }
  0xd5   :  { %v457_v27 = vpop.f32.mrf.mxu3 }
  0xd6   :  { %v458_v33 = vadd.f32 %v457_v27, %v438_v32 }
  0xd8   :  { %620 = vst [vmem:[%s750_s3] sm:$0xff] %v458_v33 }
 0x100   :  { %v477_v35 = vpop.f32.mrf.mxu0 }
 0x101   :  { %v478_v36 = vadd.f32 %v477_v35, %v297_v34 }
 0x103   :  { %v497_v37 = vpop.f32.mrf.mxu1 }
 0x104   :  { %v498_v38 = vadd.f32 %v497_v37, %v478_v36  ;;  %v517_v39 = vpop.f32.mrf.mxu2 }
 0x106   :  { %v518_v40 = vadd.f32 %v517_v39, %v498_v38 }
 0x107   :  { %v537_v41 = vpop.f32.mrf.mxu3 }
 0x108   :  { %v538_v42 = vadd.f32 %v537_v41, %v518_v40 }
 0x10a   :  { %v557_v43 = vpop.f32.mrf.mxu0 }
 0x10b   :  { %v558_v44 = vadd.f32 %v557_v43, %v538_v42 }
 0x10c   :  { %v577_v45 = vpop.f32.mrf.mxu1 }
 0x10d   :  { %v578_v46 = vadd.f32 %v577_v45, %v558_v44 }
 0x10e   :  { %v597_v47 = vpop.f32.mrf.mxu2 }
 0x10f   :  { %v598_v48 = vadd.f32 %v597_v47, %v578_v46 }
 0x110   :  { %v617_v49 = vpop.f32.mrf.mxu3 }
 0x111   :  { %v618_v50 = vadd.f32 %v617_v49, %v598_v48 }
 0x113   :  { %621 = vst [vmem:[%s750_s3 + $0x8] sm:$0xff] %v618_v50 }
 0x114   :  { %626 = vsyncpa [#allocation3], 1 }

</bundles_post_ra>
